<compile_context>
chip_gen: v6e
topology: v6e:2x2x1
jax: 0.10.0
libtpu: 0.0.40
codegen_flags: <defaults>
</compile_context>

<pallas_src>
import functools

import jax
import jax.numpy as jnp
import numpy as np
from jax.experimental import pallas as pl
from jax.experimental.pallas import tpu as pltpu


def _round_up(x, m):
    return ((x + m - 1) // m) * m


def _vmem_budget_bytes():
    """Physical-VMEM-aware scoped budget (~48 MiB on v7x, ~96 MiB on v5e/v6e)."""
    cap = 64 * 1024 * 1024  # conservative default (v7x per-core VMEM)
    try:
        info = pltpu.get_tpu_info()
        cap = int(getattr(info, "vmem_capacity_bytes", cap)) or cap
    except Exception:
        pass
    return int(0.75 * cap)


# ----------------------------------------------------------------------------
# Kernel 1: attention-based pooling. One batch tile per grid step.
#   grid = (B_pad // TB,)
# ----------------------------------------------------------------------------
def _pooled_attention_kernel(seq_ref, user_ref, mask_ref, w_ref, b_ref, pooled_ref,
                             *, seq_size, short_len, tile_b):
    S, L, TB = seq_size, short_len, tile_b

    seq = seq_ref[...]                               # (TB, S, H) compute dtype
    H = seq.shape[-1]
    seq_f32 = seq.astype(jnp.float32)
    user_f32 = user_ref[...].astype(jnp.float32)     # (TB, H)  hoisted cast
    user_row = user_f32[:, None, :]                  # (TB, 1, H) hoisted broadcast
    mask = mask_ref[...]                             # (TB, S)  1.0 -> padding (item id 0)
    w = w_ref[...]                                   # (H, 2H)  fused [w_long | w_long_short]
    b = b_ref[...]                                   # (1, 2H)  fused biases (fp32)

    neg_big = jnp.float32(-1.0e9)

    # One fused MXU slab covers both attention projections.
    seq2d = seq.reshape(TB * S, H)
    h12 = jnp.maximum(jnp.dot(seq2d, w, preferred_element_type=jnp.float32) + b, 0.0)
    h12 = h12.reshape(TB, S, 2 * H)

    # ---------------- long-term attention based pooling ----------------
    sc1 = jnp.sum(h12[:, :, :H] * user_row, axis=-1)            # (TB, S)
    sc1 = jnp.where(mask > 0.5, neg_big, sc1)
    sc1 = sc1 - jnp.max(sc1, axis=-1, keepdims=True)
    e1 = jnp.exp(sc1)
    a1 = e1 / jnp.sum(e1, axis=-1, keepdims=True)               # (TB, S)
    long_term = jnp.sum(seq_f32 * a1[:, :, None], axis=1)       # (TB, H) fp32

    # ------------- long + short term attention based pooling -----------
    sc2 = jnp.sum(h12[:, :, H:] * user_row, axis=-1)            # (TB, S)
    pos = jax.lax.broadcasted_iota(jnp.int32, (TB, S), 1)
    short_sel = (pos >= (S - L)) & (mask <= 0.5)                # valid short-window slots
    sc2 = jnp.where(short_sel, sc2, neg_big)

    h_lt = jnp.maximum(
        jnp.dot(long_term.astype(w.dtype), w, preferred_element_type=jnp.float32) + b, 0.0)
    scl = jnp.sum(h_lt[:, H:] * user_f32, axis=-1, keepdims=True)   # (TB, 1)

    # softmax over the (1 + L) positions without any concat:
    m = jnp.maximum(jnp.max(sc2, axis=-1, keepdims=True), scl)      # (TB, 1)
    el = jnp.exp(scl - m)                                           # (TB, 1)
    es = jnp.exp(sc2 - m)                                           # (TB, S); 0 outside window
    denom = el + jnp.sum(es, axis=-1, keepdims=True)
    pooled = (el * long_term + jnp.sum(seq_f32 * es[:, :, None], axis=1)) / denom
    pooled_ref[...] = pooled                                        # (TB, H) fp32


# ----------------------------------------------------------------------------
# Kernel 2: final projection (s_fc) as a tiled GEMM.
#   grid = (I_pad // TN, B_pad // TB)  -- item tiles outer, batch tiles inner,
#   so each w_fc tile is DMA'd from HBM exactly once.
# ----------------------------------------------------------------------------
def _fc_kernel(pooled_ref, wfc_ref, bfc_ref, out_ref):
    p = pooled_ref[...].astype(wfc_ref.dtype)
    logits = jnp.dot(p, wfc_ref[...], preferred_element_type=jnp.float32) + bfc_ref[...]
    out_ref[...] = logits.astype(out_ref.dtype)


# ----------------------------------------------------------------------------
# Wrapper: embedding lookup + padding/tiling in plain JAX, hot path in Pallas.
# ----------------------------------------------------------------------------
def shan_forward(params, seq_item, user, *, short_item_length,
                 tile_b=None, tile_i=2048, compute_dtype=jnp.bfloat16,
                 out_dtype=None):
    item_tab = params["item_emb"]                     # (item_num + 1, H)
    user_tab = params["user_emb"]                     # (user_num + 1, H)
    B, S = seq_item.shape
    H = item_tab.shape[1]
    I = params["w_fc"].shape[1]
    L = short_item_length

    compute_dtype = jnp.dtype(compute_dtype)
    elt = compute_dtype.itemsize
    if out_dtype is None:
        out_dtype = jnp.float32 if compute_dtype == jnp.dtype(jnp.float32) else jnp.bfloat16
    out_dtype = jnp.dtype(out_dtype)

    budget = _vmem_budget_bytes()

    # ---- batch tile: fill the MXU M dim (TB*S ~ 1024 rows, TB >= 128) ----
    granule = 8 if compute_dtype == jnp.dtype(jnp.float32) else 16
    if tile_b is None:
        tile_b = max(128, -(-1024 // max(S, 1)))
    TB = _round_up(min(int(tile_b), 512), granule)

    def _attn_vmem(tb):
        # double-buffered blocks + generous fp32 in-kernel temporary headroom
        return (2 * tb * S * H * elt + 2 * tb * H * elt + 2 * tb * S * 4
                + 2 * (2 * H * H * elt + 2 * H * 4)
                + 2 * tb * H * 4
                + 6 * tb * S * H * 4)

    while TB > granule and _attn_vmem(TB) > budget:
        TB -= granule
    TB = max(TB, granule)
    TB = min(TB, _round_up(B, granule))
    # keep >= 2 batch tiles so the "parallel" axis can feed both v7x TensorCores
    if B > granule and _round_up(B, TB) // TB < 2:
        TB = max(granule, _round_up(-(-B // 2), granule))
    B_pad = _round_up(B, TB)

    # ---- item (lane) tile: multiple of 128, big enough to amortize step cost ----
    I_pad = _round_up(I, 128)
    TN = _round_up(min(int(tile_i), I_pad), 128)

    def _fc_vmem(tn):
        return (3 * H * tn * elt + 3 * tn * 4              # w_fc + b_fc (Buffered(3))
                + 2 * TB * H * 4                            # pooled block
                + 2 * TB * tn * out_dtype.itemsize          # output tile
                + 2 * TB * tn * 4)                          # fp32 logits temporaries

    while TN > 128 and _fc_vmem(TN) > budget:
        TN -= 128
    I_pad = _round_up(I_pad, TN)

    # ---- embedding lookup (wrapper-side gather) ----
    # TODO(synk): move this gather into kernel 1 (scalar-prefetched ids +
    # memory_space=pl.ANY table with per-row async copies) to skip the (B,S,H)
    # HBM round trip, which matters most on v5e's lower HBM bandwidth.
    seq_emb = item_tab[seq_item].astype(compute_dtype)            # (B, S, H)
    user_emb = user_tab[user].astype(compute_dtype)               # (B, H)
    mask = (seq_item == 0).astype(jnp.float32)                    # (B, S)

    pad_b = B_pad - B
    if pad_b:
        seq_emb = jnp.pad(seq_emb, ((0, pad_b), (0, 0), (0, 0)))
        user_emb = jnp.pad(user_emb, ((0, pad_b), (0, 0)))
        mask = jnp.pad(mask, ((0, pad_b), (0, 0)), constant_values=1.0)

    # Fused attention projection weight [w_long | w_long_short] and the matching
    # (nn.Linear bias + extra learned bias) pairs; biases stay fp32.
    w_attn = jnp.concatenate([params["w_long"], params["w_ls"]], axis=1).astype(compute_dtype)
    b_attn = jnp.concatenate(
        [params["b_long_lin"] + params["long_b"],
         params["b_ls_lin"] + params["long_short_b"]]).astype(jnp.float32)[None, :]

    w_fc = params["w_fc"].astype(compute_dtype)
    b_fc = params["b_fc"].astype(jnp.float32)
    pad_i = I_pad - I
    if pad_i:
        w_fc = jnp.pad(w_fc, ((0, 0), (0, pad_i)))
        b_fc = jnp.pad(b_fc, ((0, pad_i),))
    b_fc = b_fc[None, :]                                          # (1, I_pad)

    # ------------------------- pallas_call 1: pooling -------------------------
    n_btile = B_pad // TB
    attn_flops = 2.0 * B_pad * (S + 1) * H * (2 * H)
    attn_bytes = ((B_pad * S * H + B_pad * H) * elt + B_pad * S * 4
                  + n_btile * (2 * H * H * elt + 2 * H * 4)       # weights per batch tile
                  + B_pad * H * 4)                                # pooled writeback
    attn_cost = pl.CostEstimate(flops=int(attn_flops),
                                transcendentals=int(B_pad * (2 * S + 1)),
                                bytes_accessed=int(attn_bytes))

    pooled = pl.pallas_call(
        functools.partial(_pooled_attention_kernel, seq_size=S, short_len=L, tile_b=TB),
        out_shape=jax.ShapeDtypeStruct((B_pad, H), jnp.float32),
        grid_spec=pltpu.PrefetchScalarGridSpec(
            num_scalar_prefetch=0,
            grid=(n_btile,),
            in_specs=[
                pl.BlockSpec((TB, S, H), lambda b: (b, 0, 0)),    # seq embeddings
                pl.BlockSpec((TB, H), lambda b: (b, 0)),          # user embeddings
                pl.BlockSpec((TB, S), lambda b: (b, 0)),          # padding mask
                pl.BlockSpec((H, 2 * H), lambda b: (0, 0)),       # fused attention weight
                pl.BlockSpec((1, 2 * H), lambda b: (0, 0)),       # fused attention biases
            ],
            out_specs=pl.BlockSpec((TB, H), lambda b: (b, 0)),
        ),
        compiler_params=pltpu.CompilerParams(
            dimension_semantics=("parallel",),
            vmem_limit_bytes=budget,
        ),
        cost_estimate=attn_cost,
    )(seq_emb, user_emb, mask, w_attn, b_attn)

    # ------------------------- pallas_call 2: s_fc GEMM ------------------------
    n_itile = I_pad // TN
    fc_flops = 2.0 * B_pad * H * I_pad
    fc_bytes = (H * I_pad * elt + I_pad * 4                       # w_fc / b_fc read once
                + n_itile * B_pad * H * 4                         # pooled re-read per item tile
                + B_pad * I_pad * out_dtype.itemsize)             # logits writeback
    fc_cost = pl.CostEstimate(flops=int(fc_flops), transcendentals=0,
                              bytes_accessed=int(fc_bytes))

    def _fc_call(buffered):
        extra = dict(pipeline_mode=pl.Buffered(3)) if buffered else {}
        return pl.pallas_call(
            _fc_kernel,
            out_shape=jax.ShapeDtypeStruct((B_pad, I_pad), out_dtype),
            grid_spec=pltpu.PrefetchScalarGridSpec(
                num_scalar_prefetch=0,
                grid=(n_itile, n_btile),          # item tiles outer, batch tiles inner
                in_specs=[
                    pl.BlockSpec((TB, H), lambda n, m: (m, 0)),           # pooled (tiny)
                    pl.BlockSpec((H, TN), lambda n, m: (0, n), **extra),  # w_fc tile (read once)
                    pl.BlockSpec((1, TN), lambda n, m: (0, n), **extra),  # b_fc tile
                ],
                out_specs=pl.BlockSpec((TB, TN), lambda n, m: (m, n)),
            ),
            compiler_params=pltpu.CompilerParams(
                dimension_semantics=("parallel", "arbitrary"),
                vmem_limit_bytes=budget,
            ),
            cost_estimate=fc_cost,
        )(pooled, w_fc, b_fc)

    try:
        out = _fc_call(True)
    except Exception:
        # pipeline_mode / Buffered not available in this jax build: plain double buffering.
        out = _fc_call(False)

    return out[:B, :I]                                            # (B, item_num)


# ----------------------------------------------------------------------------
# Pure-JAX reference (mirrors the PyTorch forward) for validation.
# ----------------------------------------------------------------------------
def shan_reference(params, seq_item, user, *, short_item_length):
    L = short_item_length
    seq_emb = params["item_emb"][seq_item]                        # (B, S, H)
    user_emb = params["user_emb"][user]                           # (B, H)
    mask = seq_item == 0                                          # (B, S)

    b_long = params["b_long_lin"] + params["long_b"]
    b_ls = params["b_ls_lin"] + params["long_short_b"]

    # long-term attention pooling
    h1 = jax.nn.relu(jnp.einsum("bsh,hk->bsk", seq_emb, params["w_long"]) + b_long)
    sc1 = jnp.einsum("bsh,bh->bs", h1, user_emb)
    sc1 = jnp.where(mask, -1.0e9, sc1)
    a1 = jax.nn.softmax(sc1, axis=1)
    long_term = jnp.sum(seq_emb * a1[:, :, None], axis=1, keepdims=True)  # (B, 1, H)

    # long + short term attention pooling
    short = seq_emb[:, -L:, :]
    mask_ls = jnp.concatenate(
        [jnp.zeros((seq_item.shape[0], 1), dtype=bool), mask[:, -L:]], axis=1)
    ls = jnp.concatenate([long_term, short], axis=1)              # (B, L+1, H)
    h2 = jax.nn.relu(jnp.einsum("bsh,hk->bsk", ls, params["w_ls"]) + b_ls)
    sc2 = jnp.einsum("bsh,bh->bs", h2, user_emb)
    sc2 = jnp.where(mask_ls, -1.0e9, sc2)
    a2 = jax.nn.softmax(sc2, axis=-1)
    pooled = jnp.sum(ls * a2[:, :, None], axis=1)                 # (B, H)

    return pooled @ params["w_fc"] + params["b_fc"]               # (B, item_num)


# ----------------------------------------------------------------------------
# Deterministic parameter init (mimics the PyTorch module's init distributions).
# ----------------------------------------------------------------------------
def init_params(key, hidden_size, item_num, user_num):
    H, I, U = hidden_size, item_num, user_num
    bound = np.sqrt(3.0 / H)
    lin_bound = 1.0 / np.sqrt(H)
    ks = jax.random.split(key, 10)
    return {
        "item_emb": 0.01 * jax.random.normal(ks[0], (I + 1, H), jnp.float32),
        "user_emb": 0.01 * jax.random.normal(ks[1], (U + 1, H), jnp.float32),
        "w_long": jax.random.uniform(ks[2], (H, H), jnp.float32, -bound, bound),
        "b_long_lin": jax.random.uniform(ks[3], (H,), jnp.float32, -lin_bound, lin_bound),
        "long_b": jax.random.uniform(ks[4], (H,), jnp.float32, -bound, bound),
        "w_ls": jax.random.uniform(ks[5], (H, H), jnp.float32, -bound, bound),
        "b_ls_lin": jax.random.uniform(ks[6], (H,), jnp.float32, -lin_bound, lin_bound),
        "long_short_b": jax.random.uniform(ks[7], (H,), jnp.float32, -bound, bound),
        "w_fc": jax.random.uniform(ks[8], (H, I), jnp.float32, -bound, bound),
        "b_fc": jax.random.uniform(ks[9], (I,), jnp.float32, -lin_bound, lin_bound),
    }


if __name__ == "__main__":
    # Small, module-consistent shapes.
    B, S, H = 4, 8, 32
    item_num, user_num, short_item_length = 64, 16, 4

    key = jax.random.PRNGKey(0)
    k_params, k_seq, k_user = jax.random.split(key, 3)

    params = init_params(k_params, H, item_num, user_num)

    seq_item = jax.random.randint(k_seq, (B, S), 1, item_num + 1, dtype=jnp.int32)
    # introduce some padding (id 0) positions to exercise the mask path
    seq_item = seq_item.at[0, -2:].set(0)
    seq_item = seq_item.at[2, -1:].set(0)
    user = jax.random.randint(k_user, (B,), 1, user_num + 1, dtype=jnp.int32)

    ref = shan_reference(params, seq_item, user, short_item_length=short_item_length)

    # fp32 path: tight check against the pure-JAX reference.
    out_f32 = shan_forward(params, seq_item, user, short_item_length=short_item_length,
                           compute_dtype=jnp.float32)
    out_f32 = jax.block_until_ready(out_f32)
    np.testing.assert_allclose(np.asarray(out_f32), np.asarray(ref), rtol=1e-4, atol=1e-5)

    # default bf16-streaming path: loose check (bf16 weights/embeddings/logits).
    out_bf16 = shan_forward(params, seq_item, user, short_item_length=short_item_length)
    out_bf16 = jax.block_until_ready(out_bf16)
    np.testing.assert_allclose(np.asarray(out_bf16, dtype=np.float32), np.asarray(ref),
                               rtol=5e-2, atol=1e-2)

    print("KERNEL_OK")
</pallas_src>

<mosaic_0001>
module attributes {stable_mosaic.version = 11 : i64} {
  func.func @_pooled_attention_kernel(%arg0: i32, %arg1: memref<8x8x32xf32, #tpu.memory_space<vmem>>, %arg2: memref<8x32xf32, #tpu.memory_space<vmem>>, %arg3: memref<8x8xf32, #tpu.memory_space<vmem>>, %arg4: memref<32x64xf32, #tpu.memory_space<vmem>>, %arg5: memref<1x64xf32, #tpu.memory_space<vmem>>, %arg6: memref<8x32xf32, #tpu.memory_space<vmem>>) attributes {dimension_semantics = [#tpu.dimension_semantics<parallel>], iteration_bounds = array<i64: 1>, scalar_prefetch = 0 : i64, scratch_operands = 0 : i64, tpu.core_type = #tpu.core_type<tc>, window_params = [{transform_indices = @transform_0, window_bounds = array<i64: 8, 8, 32>}, {transform_indices = @transform_1, window_bounds = array<i64: 8, 32>}, {transform_indices = @transform_2, window_bounds = array<i64: 8, 8>}, {pipeline_mode = #tpu.pipeline_mode<synchronous>, transform_indices = @transform_3, window_bounds = array<i64: 32, 64>}, {pipeline_mode = #tpu.pipeline_mode<synchronous>, transform_indices = @transform_4, window_bounds = array<i64: 1, 64>}, {transform_indices = @transform_5, window_bounds = array<i64: 8, 32>}]} {
    %c0 = arith.constant 0 : index
    %c0_0 = arith.constant 0 : index
    %c0_1 = arith.constant 0 : index
    %0 = vector.load %arg1[%c0, %c0_0, %c0_1] : memref<8x8x32xf32, #tpu.memory_space<vmem>>, vector<8x8x32xf32>
    %c0_2 = arith.constant 0 : index
    %c0_3 = arith.constant 0 : index
    %1 = vector.load %arg2[%c0_2, %c0_3] : memref<8x32xf32, #tpu.memory_space<vmem>>, vector<8x32xf32>
    %2 = vector.shape_cast %1 : vector<8x32xf32> to vector<8x1x32xf32>
    %c0_4 = arith.constant 0 : index
    %c0_5 = arith.constant 0 : index
    %3 = vector.load %arg3[%c0_4, %c0_5] : memref<8x8xf32, #tpu.memory_space<vmem>>, vector<8x8xf32>
    %c0_6 = arith.constant 0 : index
    %c0_7 = arith.constant 0 : index
    %4 = vector.load %arg4[%c0_6, %c0_7] : memref<32x64xf32, #tpu.memory_space<vmem>>, vector<32x64xf32>
    %c0_8 = arith.constant 0 : index
    %c0_9 = arith.constant 0 : index
    %5 = vector.load %arg5[%c0_8, %c0_9] : memref<1x64xf32, #tpu.memory_space<vmem>>, vector<1x64xf32>
    %6 = vector.shape_cast %0 : vector<8x8x32xf32> to vector<64x32xf32>
    %cst = arith.constant dense<0.000000e+00> : vector<64x64xf32>
    %7 = tpu.matmul %6, %4, %cst {dimension_numbers = #tpu.dot_dimension_numbers<[1], [0], [0], [1], [0, 0, 1, 1], [], []>} : vector<64x32xf32>, vector<32x64xf32>, vector<64x64xf32> -> vector<64x64xf32>
    %8 = vector.broadcast %5 : vector<1x64xf32> to vector<64x64xf32>
    %9 = arith.addf %7, %8 : vector<64x64xf32>
    %cst_10 = arith.constant 0.000000e+00 : f32
    %10 = vector.broadcast %cst_10 : f32 to vector<64x64xf32>
    %11 = arith.maximumf %9, %10 : vector<64x64xf32>
    %12 = vector.shape_cast %11 : vector<64x64xf32> to vector<8x8x64xf32>
    %13 = vector.extract_strided_slice %12 {offsets = [0, 0, 0], sizes = [8, 8, 32], strides = [1, 1, 1]} : vector<8x8x64xf32> to vector<8x8x32xf32>
    %14 = vector.broadcast %2 : vector<8x1x32xf32> to vector<8x8x32xf32>
    %15 = arith.mulf %13, %14 : vector<8x8x32xf32>
    %cst_11 = arith.constant dense<0.000000e+00> : vector<8x8xf32>
    %16 = vector.multi_reduction <add>, %15, %cst_11 [2] : vector<8x8x32xf32> to vector<8x8xf32>
    %cst_12 = arith.constant 5.000000e-01 : f32
    %17 = vector.broadcast %cst_12 : f32 to vector<8x8xf32>
    %18 = arith.cmpf ogt, %3, %17 : vector<8x8xf32>
    %cst_13 = arith.constant -1.000000e+09 : f32
    %19 = vector.broadcast %cst_13 : f32 to vector<8x8xf32>
    %20 = arith.select %18, %19, %16 : vector<8x8xi1>, vector<8x8xf32>
    %cst_14 = arith.constant dense<0xFF800000> : vector<8xf32>
    %21 = vector.multi_reduction <maximumf>, %20, %cst_14 [1] : vector<8x8xf32> to vector<8xf32>
    %22 = vector.shape_cast %21 : vector<8xf32> to vector<8x1xf32>
    %23 = vector.broadcast %22 : vector<8x1xf32> to vector<8x8xf32>
    %24 = arith.subf %20, %23 : vector<8x8xf32>
    %25 = math.exp %24 : vector<8x8xf32>
    %cst_15 = arith.constant dense<0.000000e+00> : vector<8xf32>
    %26 = vector.multi_reduction <add>, %25, %cst_15 [1] : vector<8x8xf32> to vector<8xf32>
    %27 = vector.shape_cast %26 : vector<8xf32> to vector<8x1xf32>
    %28 = vector.broadcast %27 : vector<8x1xf32> to vector<8x8xf32>
    %29 = arith.divf %25, %28 : vector<8x8xf32>
    %30 = vector.shape_cast %29 : vector<8x8xf32> to vector<8x8x1xf32>
    %31 = vector.broadcast %30 : vector<8x8x1xf32> to vector<8x8x32xf32>
    %32 = arith.mulf %0, %31 : vector<8x8x32xf32>
    %cst_16 = arith.constant dense<0.000000e+00> : vector<8x32xf32>
    %33 = vector.multi_reduction <add>, %32, %cst_16 [1] : vector<8x8x32xf32> to vector<8x32xf32>
    %34 = vector.extract_strided_slice %12 {offsets = [0, 0, 32], sizes = [8, 8, 32], strides = [1, 1, 1]} : vector<8x8x64xf32> to vector<8x8x32xf32>
    %35 = vector.broadcast %2 : vector<8x1x32xf32> to vector<8x8x32xf32>
    %36 = arith.mulf %34, %35 : vector<8x8x32xf32>
    %cst_17 = arith.constant dense<0.000000e+00> : vector<8x8xf32>
    %37 = vector.multi_reduction <add>, %36, %cst_17 [2] : vector<8x8x32xf32> to vector<8x8xf32>
    %38 = tpu.iota {dimensions = array<i32: 1>} : vector<8x8xi32>
    %c4_i32 = arith.constant 4 : i32
    %39 = vector.broadcast %c4_i32 : i32 to vector<8x8xi32>
    %40 = arith.cmpi sge, %38, %39 : vector<8x8xi32>
    %cst_18 = arith.constant 5.000000e-01 : f32
    %41 = vector.broadcast %cst_18 : f32 to vector<8x8xf32>
    %42 = arith.cmpf ole, %3, %41 : vector<8x8xf32>
    %43 = arith.andi %40, %42 : vector<8x8xi1>
    %cst_19 = arith.constant -1.000000e+09 : f32
    %44 = vector.broadcast %cst_19 : f32 to vector<8x8xf32>
    %45 = arith.select %43, %37, %44 : vector<8x8xi1>, vector<8x8xf32>
    %cst_20 = arith.constant dense<0.000000e+00> : vector<8x64xf32>
    %46 = tpu.matmul %33, %4, %cst_20 {dimension_numbers = #tpu.dot_dimension_numbers<[1], [0], [0], [1], [0, 0, 1, 1], [], []>} : vector<8x32xf32>, vector<32x64xf32>, vector<8x64xf32> -> vector<8x64xf32>
    %47 = vector.broadcast %5 : vector<1x64xf32> to vector<8x64xf32>
    %48 = arith.addf %46, %47 : vector<8x64xf32>
    %cst_21 = arith.constant 0.000000e+00 : f32
    %49 = vector.broadcast %cst_21 : f32 to vector<8x64xf32>
    %50 = arith.maximumf %48, %49 : vector<8x64xf32>
    %51 = vector.extract_strided_slice %50 {offsets = [0, 32], sizes = [8, 32], strides = [1, 1]} : vector<8x64xf32> to vector<8x32xf32>
    %52 = arith.mulf %51, %1 : vector<8x32xf32>
    %cst_22 = arith.constant dense<0.000000e+00> : vector<8xf32>
    %53 = vector.multi_reduction <add>, %52, %cst_22 [1] : vector<8x32xf32> to vector<8xf32>
    %54 = vector.shape_cast %53 : vector<8xf32> to vector<8x1xf32>
    %cst_23 = arith.constant dense<0xFF800000> : vector<8xf32>
    %55 = vector.multi_reduction <maximumf>, %45, %cst_23 [1] : vector<8x8xf32> to vector<8xf32>
    %56 = vector.shape_cast %55 : vector<8xf32> to vector<8x1xf32>
    %57 = arith.maximumf %56, %54 : vector<8x1xf32>
    %58 = arith.subf %54, %57 : vector<8x1xf32>
    %59 = math.exp %58 : vector<8x1xf32>
    %60 = vector.broadcast %57 : vector<8x1xf32> to vector<8x8xf32>
    %61 = arith.subf %45, %60 : vector<8x8xf32>
    %62 = math.exp %61 : vector<8x8xf32>
    %cst_24 = arith.constant dense<0.000000e+00> : vector<8xf32>
    %63 = vector.multi_reduction <add>, %62, %cst_24 [1] : vector<8x8xf32> to vector<8xf32>
    %64 = vector.shape_cast %63 : vector<8xf32> to vector<8x1xf32>
    %65 = arith.addf %59, %64 : vector<8x1xf32>
    %66 = vector.broadcast %59 : vector<8x1xf32> to vector<8x32xf32>
    %67 = arith.mulf %66, %33 : vector<8x32xf32>
    %68 = vector.shape_cast %62 : vector<8x8xf32> to vector<8x8x1xf32>
    %69 = vector.broadcast %68 : vector<8x8x1xf32> to vector<8x8x32xf32>
    %70 = arith.mulf %0, %69 : vector<8x8x32xf32>
    %cst_25 = arith.constant dense<0.000000e+00> : vector<8x32xf32>
    %71 = vector.multi_reduction <add>, %70, %cst_25 [1] : vector<8x8x32xf32> to vector<8x32xf32>
    %72 = arith.addf %67, %71 : vector<8x32xf32>
    %73 = vector.broadcast %65 : vector<8x1xf32> to vector<8x32xf32>
    %74 = arith.divf %72, %73 : vector<8x32xf32>
    %c0_26 = arith.constant 0 : index
    %c0_27 = arith.constant 0 : index
    %75 = vector.load %arg6[%c0_26, %c0_27] : memref<8x32xf32, #tpu.memory_space<vmem>>, vector<8x32xf32>
    tpu.vector_store %arg6[%c0_26, %c0_27], %74 {strides = array<i32>} : memref<8x32xf32, #tpu.memory_space<vmem>>, vector<8x32xf32>,
    return
  }
  func.func @transform_0(%arg0: i32) -> (i32, i32, i32) {
    %c0_i32 = arith.constant 0 : i32
    %c0_i32_0 = arith.constant 0 : i32
    %c0_i32_1 = arith.constant 0 : i32
    return %arg0, %c0_i32, %c0_i32_0 : i32, i32, i32
  }
  func.func @transform_1(%arg0: i32) -> (i32, i32) {
    %c0_i32 = arith.constant 0 : i32
    %c0_i32_0 = arith.constant 0 : i32
    return %arg0, %c0_i32 : i32, i32
  }
  func.func @transform_2(%arg0: i32) -> (i32, i32) {
    %c0_i32 = arith.constant 0 : i32
    %c0_i32_0 = arith.constant 0 : i32
    return %arg0, %c0_i32 : i32, i32
  }
  func.func @transform_3(%arg0: i32) -> (i32, i32) {
    %c0_i32 = arith.constant 0 : i32
    %c0_i32_0 = arith.constant 0 : i32
    %c0_i32_1 = arith.constant 0 : i32
    return %c0_i32, %c0_i32_0 : i32, i32
  }
  func.func @transform_4(%arg0: i32) -> (i32, i32) {
    %c0_i32 = arith.constant 0 : i32
    %c0_i32_0 = arith.constant 0 : i32
    %c0_i32_1 = arith.constant 0 : i32
    return %c0_i32, %c0_i32_0 : i32, i32
  }
  func.func @transform_5(%arg0: i32) -> (i32, i32) {
    %c0_i32 = arith.constant 0 : i32
    %c0_i32_0 = arith.constant 0 : i32
    return %arg0, %c0_i32 : i32, i32
  }
}

</mosaic_0001>

<bundles_post_ra>
// kernel: tpu_custom_call.1
= control target key start
LH: loop header
LB: loop body
LE: loop exit
PB: predicated region body
PF: predicated region fallthrough
CT: control target
= control target key end

     0   :  { %10 = vsyncpa [#allocation3], 0  ;;  %s1547_s0 = inlined_call_operand.hbm [shape: f32[8,8,32], index: 0, kind: input, shape index: {}]   ;;  %s1548_s1 = inlined_call_operand.hbm [shape: f32[8,32], index: 1, kind: input, shape index: {}]   ;;  %s1549_s2 = inlined_call_operand.hbm [shape: f32[8,8], index: 2, kind: input, shape index: {}]   ;;  %s1550_s3 = inlined_call_operand.hbm [shape: f32[32,64], index: 3, kind: input, shape index: {}]   ;;  %s1551_s4 = inlined_call_operand.vmem [shape: f32[1,64], index: 4, kind: input, shape index: {}]   ;;  %s1552_s5 = inlined_call_operand.hbm [shape: f32[8,32], index: 5, kind: output, shape index: {}]  }
   0x1   :  { %11 = vsyncpa [#allocation6], 0 }
   0x2   :  { %12 = vsyncpa [#allocation9], 0 }
   0x3   :  { %13 = vsyncpa [#allocation4], 0  ;;  %s1145_s18 = smov [#allocation5]   ;;  %s1146_s20 = smov [#allocation2]  }
   0x4   :  { %s32_s19 = sshll.u32 %s1145_s18, 4  ;;  %s19_s21 = sshll.u32 %s1146_s20, 4  ;;  %s33_s19 = int_to_ptr.vmem [resolvable:$true] %s32_s19  ;;  %s20_s21 = int_to_ptr.vmem [resolvable:$true] %s19_s21 }
   0x5   :  { %s1045_s22 = scalar_lea.vmem %s33_s19, 128  ;;  %p1050_p1 = scmp.lt.s32.totalorder %s33_s19, %s33_s19 }
   0x6   :  { %p1046_p0 = scmp.ne.s32.totalorder %s33_s19, %s1045_s22  ;;  %p1051_p2 = scmp.lt.s32.totalorder %s1045_s22, %s1045_s22 }
   0x8   :  { %p1052_p3 = por %p1051_p2, %p1050_p1 }
   0xa   :  { %p1053_p4 = pnand %p1052_p3, %p1046_p0 }
   0xc   :  { %1056 = shalt.err (!%p1053_p4)
}
   0xd   :  { %35 = dma.hbm_to_vmem [thread:$0]  %s1548_s1, 128, %s33_s19, [#allocation6]  }
   0xe   :  { %s1065_s25 = scalar_lea.vmem %s20_s21, 1024  ;;  %p1070_p6 = scmp.lt.s32.totalorder %s20_s21, %s20_s21 }
   0xf   :  { %p1066_p5 = scmp.ne.s32.totalorder %s20_s21, %s1065_s25  ;;  %p1071_p7 = scmp.lt.s32.totalorder %s1065_s25, %s1065_s25 }
  0x11   :  { %p1072_p8 = por %p1071_p7, %p1070_p6 }
  0x13   :  { %p1073_p9 = pnand %p1072_p8, %p1066_p5 }
  0x15   :  { %1076 = shalt.err (!%p1073_p9)
}
  0x16   :  { %s1147_s26 = smov 128   ;;  %s1148_s27 = smov 8  }
  0x17   :  { %25 = dma.hbm_to_vmem [thread:$0]  %s1547_s0, 1024, %s20_s21, [#allocation3], %s1147_s26, %s1147_s26, %s1148_s27  }
  0x18   :  { %s1149_s30 = smov [#allocation7]   ;;  %s1150_s7 = smov [#allocation8]  }
  0x19   :  { %s42_s6 = sshll.u32 %s1149_s30, 4  ;;  %s51_s8 = sshll.u32 %s1150_s7, 4  ;;  %s43_s6 = int_to_ptr.vmem [resolvable:$true] %s42_s6  ;;  %s52_s8 = int_to_ptr.vmem [resolvable:$true] %s51_s8 }
  0x1a   :  { %s1085_s1 = scalar_lea.vmem %s43_s6, 128  ;;  %p1090_p11 = scmp.lt.s32.totalorder %s43_s6, %s43_s6 }
  0x1b   :  { %p1086_p10 = scmp.ne.s32.totalorder %s43_s6, %s1085_s1  ;;  %p1091_p12 = scmp.lt.s32.totalorder %s1085_s1, %s1085_s1 }
  0x1d   :  { %p1092_p13 = por %p1091_p12, %p1090_p11 }
  0x1f   :  { %p1093_p0 = pnand %p1092_p13, %p1086_p10 }
  0x21   :  { %1096 = shalt.err (!%p1093_p0)
}
  0x22   :  { %45 = dma.hbm_to_vmem [thread:$0]  %s1549_s2, 128, %s43_s6, [#allocation6]  }
  0x23   :  { %s1105_s11 = scalar_lea.vmem %s52_s8, 512  ;;  %p1110_p2 = scmp.lt.s32.totalorder %s52_s8, %s52_s8 }
  0x24   :  { %p1106_p1 = scmp.ne.s32.totalorder %s52_s8, %s1105_s11  ;;  %p1111_p3 = scmp.lt.s32.totalorder %s1105_s11, %s1105_s11 }
  0x26   :  { %p1112_p4 = por %p1111_p3, %p1110_p2 }
  0x28   :  { %p1113_p5 = pnand %p1112_p4, %p1106_p1 }
  0x2a   :  { %1116 = shalt.err (!%p1113_p5)
}
  0x2b   :  { %57 = dma.hbm_to_vmem [thread:$0]  %s1550_s3, 512, %s52_s8, [#allocation9], %s1147_s26, %s1147_s26, %s1148_s27  }
  0x2c   :  { %1137 = dma.done.wait [#allocation3], 1024  }
  0x2d   :  { %1138 = vsyncadd [#allocation3], 4294966272 }
  0x2e   :  { %1139 = dma.done.wait [#allocation6], 256  }
  0x2f   :  { %1140 = vsyncadd [#allocation6], 4294967040 }
  0x30   :  { %1141 = dma.done.wait [#allocation9], 512  }
  0x31   :  { %1142 = vsyncadd [#allocation9], 4294966784  ;;  %vm143_vm0 = vcmask 261120   ;;  %v1199_v0 = vld [vmem:[#allocation8 + $0x18] sm:$0xff]  ;;  %v1201_v1 = vld [vmem:[#allocation8 + $0x10] sm:$0xff]  ;;  %v86_v14 = vlaneseq  ;;  %vm396_vm1 = vcmask 1041409  }
  0x32   :  { %983 = vmatprep.subr.mxu0 %v1199_v0  ;;  %v1204_v2 = vld [vmem:[#allocation2] sm:$0xff]  ;;  %v1207_v3 = vld [vmem:[#allocation8 + $0x8] sm:$0xff]  ;;  %v1213_v4 = vld [vmem:[#allocation8] sm:$0xff]  ;;  %v1151_v12 = vmov 1966171168   ;;  %vm398_vm2 = vcmask 1042434  }
  0x33   :  { %984 = vmatpush3.msra.mxu0 %v1199_v0  ;;  %991 = vmatprep.mubr.msk.f32.mxu0 %vm143_vm0, %v1204_v2  ;;  %v1217_v5 = vld [vmem:[#allocation2 + $0x8] sm:$0xff]  ;;  %v1220_v6 = vld [vmem:[#allocation2 + $0x10] sm:$0xff]  ;;  %v1227_v7 = vld [vmem:[#allocation2 + $0x18] sm:$0xff]  ;;  %v84_v13 = vunpack.c.l.s4 %v1151_v12  ;;  %v1248_v16 = vshrl.u32 %v86_v14, 7  ;;  %vm400_vm3 = vcmask 1043459   ;;  %vm402_vm4 = vcmask 1044484  }
  0x34   :  { %985 = vmatprep.subr.mxu0 %v1201_v1  ;;  %v1229_v8 = vld [vmem:[#allocation2 + $0x20] sm:$0xff]  ;;  %v1235_v9 = vld [vmem:[#allocation2 + $0x28] sm:$0xff]  ;;  %v1237_v10 = vld [vmem:[#allocation2 + $0x30] sm:$0xff]  ;;  %vm404_vm5 = vcmask 1045509   ;;  %vm406_vm6 = vcmask 1046534   ;;  %vm408_vm7 = vcmask 1047559  }
  0x35   :  { %986 = vmatpush3.msra.mxu0 %v1201_v1  ;;  %v1243_v11 = vld [vmem:[#allocation2 + $0x38] sm:$0xff]  ;;  %v85_v15 = vunpack.c.0.s8 %v84_v13  ;;  %v1251_v18 = vld [vmem:[#allocation5] sm:$0xff]  ;;  %v1257_v23 = vsub.s32 0, %v1248_v16  ;;  %vm412_vm9 = vcmask 64512   ;;  %vm1154_vm10 = vmmov 0   ;;  %s1155_s13 = smov 96  }
  0x36   :  { %987 = vmatprep.subr.mxu0 %v1207_v3  ;;  %v82_v21 = vcombine.high %v1251_v18, %v1251_v18  ;;  %v1262_v25 = vld [vmem:[%s1551_s4] ss:$0 sm:$0xff]  ;;  %s1152_s4 = smov 32   ;;  %s1156_s14 = smov [#allocation10]  }
  0x37   :  { %988 = vmatpush3.msra.mxu0 %v1207_v3  ;;  %v88_v17 = vsub.s32 %v85_v15, %v1248_v16  ;;  %s945_s15 = sshll.u32 %s1156_s14, 4  ;;  %s946_s15 = int_to_ptr.vmem [resolvable:$true] %s945_s15 }
  0x38   :  { %989 = vmatprep.subr.mxu0 %v1213_v4  ;;  %s1117_s16 = scalar_lea.vmem %s946_s15, 128  ;;  %p1122_p7 = scmp.lt.s32.totalorder %s946_s15, %s946_s15 }
  0x39   :  { %990 = vmatpush3.msra.mxu0 %v1213_v4  ;;  %v89_v19 = vrot.slane %v1251_v18, %v88_v17  ;;  %v96_v24 = vrot.slane %v82_v21, %v88_v17  ;;  %p1118_p6 = scmp.ne.s32.totalorder %s946_s15, %s1117_s16  ;;  %p1123_p8 = scmp.lt.s32.totalorder %s1117_s16, %s1117_s16 }
  0x3a   :  { %992 = vmatmul.mubr.msk.f32.vlgmr.msra.gmra.mxu0 %vm143_vm0, %v1217_v5 }
  0x3b   :  { %994 = vmatprep.mubr.msk.f32.mxu0 %vm143_vm0, %v1220_v6  ;;  %v97_v20 = vcombine.high %v89_v19, %v89_v19  ;;  %v105_v26 = vrot.slane %v89_v19, %v88_v17  ;;  %v98_v31 = vcombine.high %v96_v24, %v96_v24  ;;  %v112_v45 = vrot.slane %v96_v24, %v88_v17  ;;  %p1124_p9 = por %p1123_p8, %p1122_p7 }
  0x3d   :  { %v119_v22 = vrot.slane %v97_v20, %v88_v17  ;;  %v127_v33 = vcombine.high %v105_v26, %v105_v26  ;;  %v1275_v36 = vrot.slane %v105_v26, %v1257_v23  ;;  %v126_v42 = vrot.slane %v98_v31, %v88_v17  ;;  %p1125_p10 = pnand %p1124_p9, %p1118_p6 }
  0x3e   :  { %995 = vmatmul.mubr.msk.f32.gmra.mxu0 %vm143_vm0, %v1227_v7  ;;  %v1310_v57 = vrot.slane %v112_v45, %v1257_v23  ;;  %v128_v58 = vcombine.high %v112_v45, %v112_v45 }
  0x3f   :  { %997 = vmatprep.mubr.msk.f32.mxu0 %vm143_vm0, %v1229_v8  ;;  %v129_v28 = vcombine.high %v119_v22, %v119_v22  ;;  %v1268_v30 = vrot.slane %v119_v22, %v1257_v23  ;;  %v1288_v44 = vrot.slane %v127_v33, %v1257_v23  ;;  %v1306_v54 = vrot.slane %v126_v42, %v1257_v23 }
  0x40   :  { %v130_v59 = vcombine.high %v126_v42, %v126_v42  ;;  %v1326_v20 = vrot.slane %v128_v58, %v1257_v23 }
  0x41   :  { %v1278_v38 = vrot.slane %v129_v28, %v1257_v23 }
  0x42   :  { %998 = vmatmul.mubr.msk.f32.gmra.mxu0 %vm143_vm0, %v1235_v9  ;;  %v1329_v21 = vrot.slane %v130_v59, %v1257_v23 }
  0x43   :  { %1000 = vmatprep.mubr.msk.f32.mxu0 %vm143_vm0, %v1237_v10 }
  0x46   :  { %1001 = vmatmul.mubr.msk.f32.gmra.mxu0 %vm143_vm0, %v1243_v11 }
  0xfa   :  { %v993_v27 = vpop.f32.mrf.mxu0 }
  0xfb   :  { %v1265_v29 = vadd.f32 %v993_v27, %v1262_v25 }
  0xfc   :  { %v234_v32 = vpop.f32.mrf.mxu0 }
  0xfd   :  { %v274_v34 = vmax.f32 %v1265_v29, 0.0  ;;  %v1272_v35 = vadd.f32 %v1262_v25, %v234_v32 }
  0xfe   :  { %v996_v37 = vpop.f32.mrf.mxu0 }
  0xff   :  { %v273_v39 = vmax.f32 %v1272_v35, 0.0  ;;  %v1282_v40 = vadd.f32 %v996_v37, %v1262_v25  ;;  %v322_v41 = vmul.f32 %v1268_v30, %v274_v34 }
 0x100   :  { %v244_v43 = vpop.f32.mrf.mxu0 }
 0x101   :  { %v276_v46 = vmax.f32 %v1282_v40, 0.0  ;;  %v1292_v47 = vadd.f32 %v1262_v25, %v244_v43  ;;  %v332_v48 = vsel %vm143_vm0, %v322_v41, 0.0  ;;  %v321_v49 = vmul.f32 %v1275_v36, %v273_v39 }
 0x102   :  { %333 = vadd.xlane.f32.xlu0 %v332_v48  ;;  %v999_v50 = vpop.f32.mrf.mxu0  ;;  %v1353_v43 = vand.u32 127, %v86_v14 }
 0x103   :  { %v275_v51 = vmax.f32 %v1292_v47, 0.0  ;;  %v1300_v52 = vadd.f32 %v999_v50, %v1262_v25  ;;  %v324_v53 = vmul.f32 %v1278_v38, %v276_v46  ;;  %v329_v56 = vsel %vm143_vm0, %v321_v49, 0.0 }
 0x104   :  { %v254_v55 = vpop.f32.mrf.mxu0  ;;  %v1357_v48 = vsub.s32 %v1353_v43, %v1248_v16  ;;  %vm632_vm11 = vcmp.ge.s32.totalorder %v1353_v43, 4 }
 0x105   :  { %v278_v60 = vmax.f32 %v1300_v52, 0.0  ;;  %v1314_v61 = vadd.f32 %v1262_v25, %v254_v55  ;;  %v338_v62 = vsel %vm143_vm0, %v324_v53, 0.0  ;;  %v323_v63 = vmul.f32 %v1288_v44, %v275_v51 }
 0x106   :  { %339 = vadd.xlane.f32.xlu1 %v338_v62  ;;  %v1002_v12 = vpop.f32.mrf.mxu0  ;;  %330 = vadd.xlane.f32.xlu0 %v329_v56 }
 0x107   :  { %v277_v13 = vmax.f32 %v1314_v61, 0.0  ;;  %v1322_v15 = vadd.f32 %v1002_v12, %v1262_v25  ;;  %v335_v19 = vsel %vm143_vm0, %v323_v63, 0.0  ;;  %v326_v27 = vmul.f32 %v1306_v54, %v278_v60 }
 0x108   :  { %v264_v17 = vpop.f32.mrf.mxu0 }
 0x109   :  { %v280_v22 = vmax.f32 %v1322_v15, 0.0  ;;  %v1333_v24 = vadd.f32 %v1262_v25, %v264_v17  ;;  %v325_v26 = vmul.f32 %v1310_v57, %v277_v13  ;;  %v344_v32 = vsel %vm143_vm0, %v326_v27, 0.0 }
 0x10a   :  { %336 = vadd.xlane.f32.xlu1 %v335_v19 }
 0x10b   :  { %v279_v28 = vmax.f32 %v1333_v24, 0.0  ;;  %v341_v31 = vsel %vm143_vm0, %v325_v26, 0.0  ;;  %v328_v37 = vmul.f32 %v1329_v21, %v280_v22 }
 0x10c   :  { %342 = vadd.xlane.f32.xlu0 %v341_v31 }
 0x10d   :  { %v327_v33 = vmul.f32 %v1326_v20, %v279_v28  ;;  %v350_v42 = vsel %vm143_vm0, %v328_v37, 0.0 }
 0x10e   :  { %345 = vadd.xlane.f32.xlu1 %v344_v32  ;;  %v1369_v32 = vld [vmem:[#allocation7] sm:$0xff] }
 0x10f   :  { %v347_v41 = vsel %vm143_vm0, %v327_v33, 0.0  ;;  %vm353_vm8 = vcmp.gt.f32.partialorder %v1369_v32, 0.5  ;;  %vm633_vm12 = vcmp.le.f32.partialorder %v1369_v32, 0.5 }
 0x110   :  { %348 = vadd.xlane.f32.xlu0 %v347_v41  ;;  %vm634_vm13 = vmand %vm632_vm11, %vm633_vm12 }
 0x112   :  { %351 = vadd.xlane.f32.xlu1 %v350_v42 }
 0x18b   :  { %v334_v45 = vpop.xlane.xlu0 %333 }
 0x18c   :  { %v371_v55 = vrot.slane %v334_v45, %v1357_v48 }
 0x18f   :  { %v340_v49 = vpop.xlane.xlu1 %339  ;;  %v331_v50 = vpop.xlane.xlu0 %330 }
 0x190   :  { %v367_v53 = vrot.slane %v331_v50, %v1357_v48  ;;  %v379_v14 = vrot.slane %v340_v49, %v1357_v48 }
 0x192   :  { %v397_v59 = vsel %vm396_vm1, %v371_v55, %v367_v53 }
 0x193   :  { %v337_v56 = vpop.xlane.xlu1 %336 }
 0x194   :  { %v375_v58 = vrot.slane %v337_v56, %v1357_v48 }
 0x195   :  { %v343_v62 = vpop.xlane.xlu0 %342 }
 0x196   :  { %v399_v63 = vsel %vm398_vm2, %v375_v58, %v397_v59  ;;  %v383_v12 = vrot.slane %v343_v62, %v1357_v48 }
 0x197   :  { %v401_v17 = vsel %vm400_vm3, %v379_v14, %v399_v63  ;;  %v346_v19 = vpop.xlane.xlu1 %345  ;;  %v433_v63 = vsub.s32 1, %v1248_v16 }
 0x198   :  { %v403_v26 = vsel %vm402_vm4, %v383_v12, %v401_v17  ;;  %v387_v27 = vrot.slane %v346_v19, %v1357_v48 }
 0x199   :  { %v349_v31 = vpop.xlane.xlu0 %348 }
 0x19a   :  { %v405_v33 = vsel %vm404_vm5, %v387_v27, %v403_v26  ;;  %v391_v37 = vrot.slane %v349_v31, %v1357_v48  ;;  %v440_v27 = vsub.s32 2, %v1248_v16  ;;  %v454_v31 = vsub.s32 4, %v1248_v16 }
 0x19b   :  { %v352_v41 = vpop.xlane.xlu1 %351 }
 0x19c   :  { %v395_v42 = vrot.slane %v352_v41, %v1357_v48  ;;  %v407_v45 = vsel %vm406_vm6, %v391_v37, %v405_v33  ;;  %v447_v41 = vsub.s32 3, %v1248_v16 }
 0x19e   :  { %v409_v49 = vsel %vm408_vm7, %v395_v42, %v407_v45  ;;  %v1554_v42 = vsub.s32 6, %v1248_v16 }
 0x19f   :  { %v411_v50 = vsel %vm353_vm8, -1e+09, %v409_v49 }
 0x1a0   :  { %v413_v53 = vsel %vm412_vm9, %v411_v50, -inf }
 0x1a1   :  { %414 = vmax.xlane.f32.xlu0 %v413_v53 }
 0x22a   :  { %v415_v55 = vpop.xlane.xlu0 %414 }
 0x22b   :  { %v416_v56 = vsub.f32 %v411_v50, %v415_v55  ;;  %v461_v50 = vsub.s32 5, %v1248_v16  ;;  %v1553_v55 = vsub.s32 7, %v1248_v16 }
 0x22d   :  { %v417_v58 = vmul.f32 1.442695, %v416_v56  ;;  %v1153_v56 = vmov 0.0  }
 0x22e   :  { %1003 = vmatprep.subr.mxu1 %v1153_v56  ;;  %1011 = vmatprep.mubr.msk.f32.mxu1 %vm1154_vm10, %v1153_v56 }
 0x22f   :  { %1027 = vpow2.f32 %v417_v58  ;;  %1004 = vmatpush3.msra.mxu1 %v1199_v0 }
 0x230   :  { %1005 = vmatprep.subr.mxu1 %v1153_v56 }
 0x231   :  { %1006 = vmatpush3.msra.mxu1 %v1201_v1 }
 0x232   :  { %1007 = vmatprep.subr.mxu1 %v1153_v56 }
 0x233   :  { %1008 = vmatpush3.msra.mxu1 %v1207_v3 }
 0x234   :  { %1009 = vmatprep.subr.mxu1 %v1153_v56 }
 0x235   :  { %1010 = vmatpush3.msra.mxu1 %v1213_v4 }
 0x23c   :  { %v1028_v14 = vpop.eup %1027 }
 0x23d   :  { %v419_v59 = vsel %vm412_vm9, %v1028_v14, 0.0 }
 0x23e   :  { %420 = vadd.xlane.f32.xlu1 %v419_v59 }
 0x2c7   :  { %v421_v62 = vpop.xlane.xlu1 %420 }
 0x2c8   :  { %1029 = vrcp.f32 %v421_v62 }
 0x2d5   :  { %v1030_v12 = vpop.eup %1029 }
 0x2d6   :  { %v423_v17 = vmul.f32 %v1030_v12, %v1028_v14 }
 0x2d8   :  { %v434_v19 = vrot.slane %v423_v17, %v433_v63  ;;  %v427_v26 = vrot.slane %v423_v17, %v1257_v23  ;;  %v441_v33 = vrot.slane %v423_v17, %v440_v27  ;;  %v455_v37 = vrot.slane %v423_v17, %v454_v31 }
 0x2d9   :  { %v448_v45 = vrot.slane %v423_v17, %v447_v41  ;;  %v469_v49 = vrot.slane %v423_v17, %v1554_v42  ;;  %v462_v53 = vrot.slane %v423_v17, %v461_v50  ;;  %v476_v58 = vrot.slane %v423_v17, %v1553_v55 }
 0x2da   :  { %436 = vbcast.lane.b32.xlu1 %v434_v19, 256  ;;  %429 = vbcast.lane.b32.xlu0 %v427_v26, 256 }
 0x2de   :  { %443 = vbcast.lane.b32.xlu1 %v441_v33, 256  ;;  %457 = vbcast.lane.b32.xlu0 %v455_v37, 256 }
 0x2e2   :  { %450 = vbcast.lane.b32.xlu1 %v448_v45, 256  ;;  %471 = vbcast.lane.b32.xlu0 %v469_v49, 256 }
 0x2e6   :  { %464 = vbcast.lane.b32.xlu1 %v462_v53, 256  ;;  %544 = vrot.lane.b32.xlu0 %v1275_v36, %s1152_s4 }
 0x2ea   :  { %478 = vbcast.lane.b32.xlu1 %v476_v58, 256  ;;  %548 = vrot.lane.b32.xlu0 %v1288_v44, %s1152_s4 }
 0x2ee   :  { %546 = vrot.lane.b32.xlu1 %v1268_v30, %s1152_s4  ;;  %552 = vrot.lane.b32.xlu0 %v1310_v57, %s1152_s4 }
 0x2f2   :  { %550 = vrot.lane.b32.xlu1 %v1278_v38, %s1152_s4  ;;  %556 = vrot.lane.b32.xlu0 %v1326_v20, %s1152_s4 }
 0x2f6   :  { %554 = vrot.lane.b32.xlu1 %v1306_v54, %s1152_s4 }
 0x2fa   :  { %558 = vrot.lane.b32.xlu1 %v1329_v21, %s1152_s4 }
 0x34c   :  { %v437_v0 = vpop.permute.xlu1 %436  ;;  %v430_v1 = vpop.permute.xlu0 %429 }
 0x34d   :  { %v481_v3 = vmul.f32 %v437_v0, %v1217_v5  ;;  %v480_v30 = vmul.f32 %v430_v1, %v1204_v2 }
 0x34f   :  { %v495_v4 = vsel %vm143_vm0, %v481_v3, 0.0  ;;  %v488_v36 = vsel %vm143_vm0, %v480_v30, 0.0 }
 0x350   :  { %v496_v38 = vrot.slane %v495_v4, 4  ;;  %v489_v44 = vrot.slane %v488_v36, 4  ;;  %v444_v57 = vpop.permute.xlu1 %443  ;;  %v458_v20 = vpop.permute.xlu0 %457 }
 0x351   :  { %v482_v14 = vmul.f32 %v444_v57, %v1220_v6  ;;  %v484_v54 = vmul.f32 %v458_v20, %v1229_v8 }
 0x352   :  { %v497_v59 = vadd.f32 %v496_v38, %v495_v4  ;;  %v490_v21 = vadd.f32 %v489_v44, %v488_v36 }
 0x353   :  { %v502_v62 = vsel %vm143_vm0, %v482_v14, 0.0  ;;  %v516_v12 = vsel %vm143_vm0, %v484_v54, 0.0 }
 0x354   :  { %v498_v17 = vrot.slane %v497_v59, 2  ;;  %v491_v19 = vrot.slane %v490_v21, 2  ;;  %v503_v26 = vrot.slane %v502_v62, 4  ;;  %v517_v33 = vrot.slane %v516_v12, 4  ;;  %v451_v37 = vpop.permute.xlu1 %450  ;;  %v472_v45 = vpop.permute.xlu0 %471 }
 0x355   :  { %v483_v49 = vmul.f32 %v451_v37, %v1227_v7  ;;  %v486_v53 = vmul.f32 %v472_v45, %v1237_v10 }
 0x356   :  { %v499_v56 = vadd.f32 %v498_v17, %v497_v59  ;;  %v504_v58 = vadd.f32 %v503_v26, %v502_v62  ;;  %v518_v0 = vadd.f32 %v517_v33, %v516_v12  ;;  %v492_v1 = vadd.f32 %v491_v19, %v490_v21 }
 0x357   :  { %v509_v3 = vsel %vm143_vm0, %v483_v49, 0.0  ;;  %v530_v30 = vsel %vm143_vm0, %v486_v53, 0.0 }
 0x358   :  { %v505_v4 = vrot.slane %v504_v58, 2  ;;  %v519_v36 = vrot.slane %v518_v0, 2  ;;  %v465_v38 = vpop.permute.xlu1 %464  ;;  %v545_v44 = vpop.permute.xlu0 %544  ;;  %v510_v57 = vrot.slane %v509_v3, 4  ;;  %v531_v20 = vrot.slane %v530_v30, 4 }
 0x359   :  { %v485_v14 = vmul.f32 %v465_v38, %v1235_v9  ;;  %v568_v54 = vmul.f32 %v545_v44, %v273_v39  ;;  %v500_v37 = vrot.slane %v499_v56, 1  ;;  %v493_v62 = vrot.slane %v492_v1, 1 }
 0x35a   :  { %v506_v59 = vadd.f32 %v505_v4, %v504_v58  ;;  %v511_v12 = vadd.f32 %v510_v57, %v509_v3  ;;  %v532_v21 = vadd.f32 %v531_v20, %v530_v30  ;;  %v520_v26 = vadd.f32 %v519_v36, %v518_v0 }
 0x35b   :  { %v523_v17 = vsel %vm143_vm0, %v485_v14, 0.0  ;;  %584 = vrot.lane.b32.xlu0 %v568_v54, %s1155_s13  ;;  %v501_v3 = vadd.f32 %v500_v37, %v499_v56  ;;  %v494_v30 = vadd.f32 %v493_v62, %v492_v1 }
 0x35c   :  { %v507_v19 = vrot.slane %v506_v59, 1  ;;  %v524_v33 = vrot.slane %v523_v17, 4  ;;  %v479_v45 = vpop.permute.xlu1 %478  ;;  %v549_v49 = vpop.permute.xlu0 %548  ;;  %v512_v53 = vrot.slane %v511_v12, 2  ;;  %v533_v38 = vrot.slane %v532_v21, 2 }
 0x35d   :  { %v487_v35 = vmul.f32 %v479_v45, %v1243_v11  ;;  %v570_v39 = vmul.f32 %v549_v49, %v275_v51  ;;  %v521_v0 = vrot.slane %v520_v26, 1  ;;  %v692_v37 = vsel %vm396_vm1, %v501_v3, %v494_v30 }
 0x35e   :  { %v525_v58 = vadd.f32 %v524_v33, %v523_v17  ;;  %v513_v4 = vadd.f32 %v512_v53, %v511_v12  ;;  %v508_v57 = vadd.f32 %v507_v19, %v506_v59  ;;  %v534_v42 = vadd.f32 %v533_v38, %v532_v21 }
 0x35f   :  { %v537_v44 = vsel %vm143_vm0, %v487_v35, 0.0  ;;  %588 = vrot.lane.b32.xlu0 %v570_v39, %s1155_s13  ;;  %v522_v12 = vadd.f32 %v521_v0, %v520_v26 }
 0x360   :  { %v526_v36 = vrot.slane %v525_v58, 2  ;;  %v538_v20 = vrot.slane %v537_v44, 4  ;;  %v547_v14 = vpop.permute.xlu1 %546  ;;  %v553_v54 = vpop.permute.xlu0 %552  ;;  %v514_v55 = vrot.slane %v513_v4, 1  ;;  %v693_v59 = vsel %vm398_vm2, %v508_v57, %v692_v37 }
 0x361   :  { %v569_v47 = vmul.f32 %v547_v14, %v274_v34  ;;  %v572_v51 = vmul.f32 %v553_v54, %v277_v13  ;;  %v535_v61 = vrot.slane %v534_v42, 1 }
 0x362   :  { %v527_v56 = vadd.f32 %v526_v36, %v525_v58  ;;  %v539_v1 = vadd.f32 %v538_v20, %v537_v44  ;;  %v515_v62 = vadd.f32 %v514_v55, %v513_v4 }
 0x363   :  { %586 = vrot.lane.b32.xlu1 %v569_v47, %s1155_s13  ;;  %592 = vrot.lane.b32.xlu0 %v572_v51, %s1155_s13  ;;  %v536_v35 = vadd.f32 %v535_v61, %v534_v42 }
 0x364   :  { %v528_v17 = vrot.slane %v527_v56, 1  ;;  %v540_v21 = vrot.slane %v539_v1, 2  ;;  %v551_v19 = vpop.permute.xlu1 %550  ;;  %v557_v29 = vpop.permute.xlu0 %556  ;;  %v694_v34 = vsel %vm400_vm3, %v515_v62, %v693_v59 }
 0x365   :  { %v571_v13 = vmul.f32 %v551_v19, %v276_v46  ;;  %v574_v55 = vmul.f32 %v557_v29, %v279_v28  ;;  %v695_v26 = vsel %vm402_vm4, %v522_v12, %v694_v34 }
 0x366   :  { %v529_v33 = vadd.f32 %v528_v17, %v527_v56  ;;  %v541_v45 = vadd.f32 %v540_v21, %v539_v1 }
 0x367   :  { %590 = vrot.lane.b32.xlu1 %v571_v13, %s1155_s13  ;;  %596 = vrot.lane.b32.xlu0 %v574_v55, %s1155_s13 }
 0x368   :  { %v542_v49 = vrot.slane %v541_v45, 1  ;;  %v555_v53 = vpop.permute.xlu1 %554  ;;  %v696_v38 = vsel %vm404_vm5, %v529_v33, %v695_v26 }
 0x369   :  { %v573_v40 = vmul.f32 %v555_v53, %v278_v60  ;;  %v697_v24 = vsel %vm406_vm6, %v536_v35, %v696_v38 }
 0x36a   :  { %v543_v46 = vadd.f32 %v542_v49, %v541_v45 }
 0x36b   :  { %594 = vrot.lane.b32.xlu1 %v573_v40, %s1155_s13  ;;  %772 = vrot.lane.b32.xlu0 %v1251_v18, %s1152_s4 }
 0x36c   :  { %v559_v28 = vpop.permute.xlu1 %558  ;;  %v1467_v39 = vsel %vm408_vm7, %v543_v46, %v697_v24 }
 0x36d   :  { %v575_v58 = vmul.f32 %v559_v28, %v280_v22  ;;  %1012 = vmatmul.mubr.msk.f32.vlgmr.msra.gmra.mxu1 %vm143_vm0, %v1467_v39 }
 0x36f   :  { %598 = vrot.lane.b32.xlu1 %v575_v58, %s1155_s13 }
 0x3cd   :  { %v585_v52 = vpop.permute.xlu0 %584 }
 0x3ce   :  { %v608_v60 = vsel %vm143_vm0, %v585_v52, 0.0 }
 0x3cf   :  { %609 = vadd.xlane.f32.xlu1 %v608_v60 }
 0x3d1   :  { %v589_v42 = vpop.permute.xlu0 %588 }
 0x3d2   :  { %v614_v44 = vsel %vm143_vm0, %v589_v42, 0.0 }
 0x3d5   :  { %v587_v3 = vpop.permute.xlu1 %586  ;;  %v593_v30 = vpop.permute.xlu0 %592 }
 0x3d6   :  { %v611_v18 = vsel %vm143_vm0, %v587_v3, 0.0  ;;  %v620_v4 = vsel %vm143_vm0, %v593_v30, 0.0 }
 0x3d7   :  { %612 = vadd.xlane.f32.xlu0 %v611_v18  ;;  %621 = vadd.xlane.f32.xlu1 %v620_v4 }
 0x3d9   :  { %v591_v15 = vpop.permute.xlu1 %590  ;;  %v597_v22 = vpop.permute.xlu0 %596 }
 0x3da   :  { %v626_v57 = vsel %vm143_vm0, %v597_v22, 0.0  ;;  %v617_v36 = vsel %vm143_vm0, %v591_v15, 0.0 }
 0x3db   :  { %615 = vadd.xlane.f32.xlu0 %v614_v44  ;;  %627 = vadd.xlane.f32.xlu1 %v626_v57 }
 0x3dd   :  { %v595_v0 = vpop.permute.xlu1 %594  ;;  %v773_v1 = vpop.permute.xlu0 %772 }
 0x3de   :  { %v623_v20 = vsel %vm143_vm0, %v595_v0, 0.0 }
 0x3df   :  { %618 = vadd.xlane.f32.xlu0 %v617_v36 }
 0x3e1   :  { %v599_v14 = vpop.permute.xlu1 %598 }
 0x3e2   :  { %v629_v54 = vsel %vm143_vm0, %v599_v14, 0.0 }
 0x3e3   :  { %624 = vadd.xlane.f32.xlu0 %v623_v20 }
 0x3e7   :  { %630 = vadd.xlane.f32.xlu0 %v629_v54 }
 0x42d   :  { %v767_v47 = vpop.f32.mrf.mxu1 }
 0x42e   :  { %v768_v51 = vadd.f32 %v1262_v25, %v767_v47 }
 0x42f   :  { %v1013_v56 = vpop.f32.mrf.mxu1 }
 0x430   :  { %v771_v37 = vmax.f32 %v768_v51, 0.0 }
 0x432   :  { %v775_v62 = vmul.f32 %v773_v1, %v771_v37 }
 0x434   :  { %777 = vrot.lane.b32.xlu1 %v775_v62, %s1155_s13 }
 0x458   :  { %v610_v21 = vpop.xlane.xlu1 %609 }
 0x459   :  { %v646_v61 = vrot.slane %v610_v21, %v1357_v48 }
 0x460   :  { %v613_v59 = vpop.xlane.xlu0 %612  ;;  %v622_v13 = vpop.xlane.xlu1 %621 }
 0x461   :  { %v650_v19 = vrot.slane %v613_v59, %v1357_v48  ;;  %v662_v49 = vrot.slane %v622_v13, %v1357_v48 }
 0x463   :  { %v675_v55 = vsel %vm396_vm1, %v650_v19, %v646_v61 }
 0x464   :  { %v616_v12 = vpop.xlane.xlu0 %615  ;;  %v628_v38 = vpop.xlane.xlu1 %627 }
 0x465   :  { %v654_v29 = vrot.slane %v616_v12, %v1357_v48  ;;  %v670_v24 = vrot.slane %v628_v38, %v1357_v48 }
 0x467   :  { %v676_v33 = vsel %vm398_vm2, %v654_v29, %v675_v55 }
 0x468   :  { %v619_v17 = vpop.xlane.xlu0 %618 }
 0x469   :  { %v658_v25 = vrot.slane %v619_v17, %v1357_v48 }
 0x46b   :  { %v677_v45 = vsel %vm400_vm3, %v658_v25, %v676_v33 }
 0x46c   :  { %v625_v34 = vpop.xlane.xlu0 %624  ;;  %v678_v35 = vsel %vm402_vm4, %v662_v49, %v677_v45 }
 0x46d   :  { %v666_v26 = vrot.slane %v625_v34, %v1357_v48 }
 0x46f   :  { %v679_v40 = vsel %vm404_vm5, %v666_v26, %v678_v35 }
 0x470   :  { %v631_v53 = vpop.xlane.xlu0 %630  ;;  %v680_v28 = vsel %vm406_vm6, %v670_v24, %v679_v40 }
 0x471   :  { %v674_v46 = vrot.slane %v631_v53, %v1357_v48 }
 0x473   :  { %v681_v58 = vsel %vm408_vm7, %v674_v46, %v680_v28 }
 0x474   :  { %v683_v42 = vsel %vm634_vm13, %v681_v58, -1e+09 }
 0x475   :  { %v783_v3 = vsel %vm412_vm9, %v683_v42, -inf }
 0x4a6   :  { %v778_v52 = vpop.permute.xlu1 %777 }
 0x4a7   :  { %v780_v60 = vsel %vm143_vm0, %v778_v52, 0.0 }
 0x4a8   :  { %781 = vadd.xlane.f32.xlu0 %v780_v60 }
 0x4ac   :  { %784 = vmax.xlane.f32.xlu0 %v783_v3 }
 0x531   :  { %v782_v30 = vpop.xlane.xlu0 %781 }
 0x535   :  { %v785_v18 = vpop.xlane.xlu0 %784 }
 0x536   :  { %v786_v48 = vmax.f32 %v785_v18, %v782_v30 }
 0x538   :  { %v787_v4 = vsub.f32 %v782_v30, %v786_v48  ;;  %v790_v43 = vsub.f32 %v683_v42, %v786_v48 }
 0x53a   :  { %v791_v15 = vmul.f32 1.442695, %v790_v43  ;;  %v788_v37 = vmul.f32 1.442695, %v787_v4 }
 0x53c   :  { %1031 = vpow2.f32 %v791_v15 }
 0x53d   :  { %1033 = vpow2.f32 %v788_v37 }
 0x549   :  { %v1032_v32 = vpop.eup %1031 }
 0x54a   :  { %v793_v22 = vsel %vm412_vm9, %v1032_v32, 0.0  ;;  %v809_v44 = vrot.slane %v1032_v32, %v433_v63  ;;  %v816_v57 = vrot.slane %v1032_v32, %v440_v27  ;;  %v823_v0 = vrot.slane %v1032_v32, %v447_v41  ;;  %v1034_v3 = vpop.eup %1033 }
 0x54b   :  { %794 = vadd.xlane.f32.xlu0 %v793_v22  ;;  %v830_v36 = vrot.slane %v1032_v32, %v454_v31  ;;  %v837_v20 = vrot.slane %v1032_v32, %v461_v50  ;;  %v1555_v63 = vsub.s32 6, %v1248_v16  ;;  %v802_v54 = vrot.slane %v1032_v32, %v1257_v23 }
 0x54c   :  { %811 = vbcast.lane.b32.xlu1 %v809_v44, 256  ;;  %v1556_v27 = vsub.s32 7, %v1248_v16 }
 0x54d   :  { %v844_v14 = vrot.slane %v1032_v32, %v1555_v63 }
 0x54e   :  { %v851_v47 = vrot.slane %v1032_v32, %v1556_v27 }
 0x550   :  { %818 = vbcast.lane.b32.xlu1 %v816_v57, 256 }
 0x554   :  { %825 = vbcast.lane.b32.xlu1 %v823_v0, 256 }
 0x558   :  { %832 = vbcast.lane.b32.xlu1 %v830_v36, 256 }
 0x55c   :  { %839 = vbcast.lane.b32.xlu1 %v837_v20, 256 }
 0x560   :  { %846 = vbcast.lane.b32.xlu1 %v844_v14, 256 }
 0x561   :  { %804 = vbcast.lane.b32.xlu0 %v802_v54, 256 }
 0x565   :  { %853 = vbcast.lane.b32.xlu0 %v851_v47, 256 }
 0x5be   :  { %v812_v41 = vpop.permute.xlu1 %811 }
 0x5bf   :  { %v856_v1 = vmul.f32 %v812_v41, %v1217_v5 }
 0x5c1   :  { %v870_v12 = vsel %vm143_vm0, %v856_v1, 0.0 }
 0x5c2   :  { %v819_v51 = vpop.permute.xlu1 %818  ;;  %v871_v19 = vrot.slane %v870_v12, 4 }
 0x5c3   :  { %v857_v50 = vmul.f32 %v819_v51, %v1220_v6 }
 0x5c5   :  { %v877_v17 = vsel %vm143_vm0, %v857_v50, 0.0 }
 0x5c6   :  { %v826_v56 = vpop.permute.xlu1 %825  ;;  %v878_v6 = vrot.slane %v877_v17, 4 }
 0x5c7   :  { %v858_v62 = vmul.f32 %v826_v56, %v1227_v7 }
 0x5c8   :  { %v879_v33 = vadd.f32 %v878_v6, %v877_v17 }
 0x5c9   :  { %v884_v21 = vsel %vm143_vm0, %v858_v62, 0.0 }
 0x5ca   :  { %v833_v31 = vpop.permute.xlu1 %832  ;;  %v880_v46 = vrot.slane %v879_v33, 2 }
 0x5cb   :  { %v859_v59 = vmul.f32 %v833_v31, %v1229_v8  ;;  %v885_v8 = vrot.slane %v884_v21, 4 }
 0x5cc   :  { %v881_v4 = vadd.f32 %v880_v46, %v879_v33 }
 0x5cd   :  { %v891_v5 = vsel %vm143_vm0, %v859_v59, 0.0  ;;  %v886_v26 = vadd.f32 %v885_v8, %v884_v21 }
 0x5ce   :  { %v840_v23 = vpop.permute.xlu1 %839  ;;  %v892_v13 = vrot.slane %v891_v5, 4  ;;  %v882_v14 = vrot.slane %v881_v4, 1 }
 0x5cf   :  { %v860_v16 = vmul.f32 %v840_v23, %v1235_v9  ;;  %v872_v9 = vadd.f32 %v871_v19, %v870_v12  ;;  %v887_v28 = vrot.slane %v886_v26, 2 }
 0x5d0   :  { %v893_v53 = vadd.f32 %v892_v13, %v891_v5  ;;  %v883_v50 = vadd.f32 %v882_v14, %v881_v4 }
 0x5d1   :  { %v898_v34 = vsel %vm143_vm0, %v860_v16, 0.0  ;;  %v873_v35 = vrot.slane %v872_v9, 2  ;;  %v888_v32 = vadd.f32 %v887_v28, %v886_v26 }
 0x5d2   :  { %v847_v29 = vpop.permute.xlu1 %846  ;;  %v899_v55 = vrot.slane %v898_v34, 4  ;;  %v894_v60 = vrot.slane %v893_v53, 2 }
 0x5d3   :  { %v861_v7 = vmul.f32 %v847_v29, %v1237_v10  ;;  %v874_v30 = vadd.f32 %v873_v35, %v872_v9 }
 0x5d4   :  { %v795_v61 = vpop.xlane.xlu0 %794  ;;  %v900_v40 = vadd.f32 %v899_v55, %v898_v34  ;;  %v895_v57 = vadd.f32 %v894_v60, %v893_v53  ;;  %v798_v34 = vmul.f32 %v1034_v3, %v1467_v39 }
 0x5d5   :  { %v905_v25 = vsel %vm143_vm0, %v861_v7, 0.0  ;;  %v796_v15 = vadd.f32 %v1034_v3, %v795_v61  ;;  %v875_v0 = vrot.slane %v874_v30, 1 }
 0x5d6   :  { %v906_v45 = vrot.slane %v905_v25, 4  ;;  %v901_v18 = vrot.slane %v900_v40, 2  ;;  %v896_v41 = vrot.slane %v895_v57, 1 }
 0x5d7   :  { %1035 = vrcp.f32 %v796_v15  ;;  %v876_v51 = vadd.f32 %v875_v0, %v874_v30 }
 0x5d8   :  { %v805_v49 = vpop.permute.xlu0 %804  ;;  %v907_v24 = vadd.f32 %v906_v45, %v905_v25  ;;  %v902_v36 = vadd.f32 %v901_v18, %v900_v40  ;;  %v897_v12 = vadd.f32 %v896_v41, %v895_v57 }
 0x5d9   :  { %v855_v38 = vmul.f32 %v805_v49, %v1204_v2 }
 0x5da   :  { %v908_v43 = vrot.slane %v907_v24, 2  ;;  %v903_v56 = vrot.slane %v902_v36, 1 }
 0x5db   :  { %v863_v10 = vsel %vm143_vm0, %v855_v38, 0.0 }
 0x5dc   :  { %v864_v58 = vrot.slane %v863_v10, 4  ;;  %v854_v52 = vpop.permute.xlu0 %853  ;;  %v909_v54 = vadd.f32 %v908_v43, %v907_v24  ;;  %v904_v17 = vadd.f32 %v903_v56, %v902_v36 }
 0x5dd   :  { %v862_v42 = vmul.f32 %v854_v52, %v1243_v11  ;;  %v889_v11 = vrot.slane %v888_v32, 1 }
 0x5de   :  { %v865_v48 = vadd.f32 %v864_v58, %v863_v10  ;;  %v910_v37 = vrot.slane %v909_v54, 1 }
 0x5df   :  { %v912_v2 = vsel %vm143_vm0, %v862_v42, 0.0  ;;  %v890_v62 = vadd.f32 %v889_v11, %v888_v32 }
 0x5e0   :  { %v866_v22 = vrot.slane %v865_v48, 2  ;;  %v913_v44 = vrot.slane %v912_v2, 4  ;;  %v911_v19 = vadd.f32 %v910_v37, %v909_v54 }
 0x5e2   :  { %v867_v20 = vadd.f32 %v866_v22, %v865_v48  ;;  %v914_v63 = vadd.f32 %v913_v44, %v912_v2 }
 0x5e4   :  { %v868_v27 = vrot.slane %v867_v20, 1  ;;  %v915_v47 = vrot.slane %v914_v63, 2  ;;  %v1036_v13 = vpop.eup %1035 }
 0x5e6   :  { %v869_v31 = vadd.f32 %v868_v27, %v867_v20  ;;  %v916_v1 = vadd.f32 %v915_v47, %v914_v63 }
 0x5e8   :  { %v927_v59 = vsel %vm396_vm1, %v876_v51, %v869_v31  ;;  %v917_v23 = vrot.slane %v916_v1, 1 }
 0x5e9   :  { %v928_v16 = vsel %vm398_vm2, %v883_v50, %v927_v59 }
 0x5ea   :  { %v929_v21 = vsel %vm400_vm3, %v890_v62, %v928_v16  ;;  %v918_v29 = vadd.f32 %v917_v23, %v916_v1 }
 0x5eb   :  { %v930_v5 = vsel %vm402_vm4, %v897_v12, %v929_v21 }
 0x5ec   :  { %v931_v6 = vsel %vm404_vm5, %v904_v17, %v930_v5 }
 0x5ed   :  { %v932_v7 = vsel %vm406_vm6, %v911_v19, %v931_v6 }
 0x5ee   :  { %v933_v8 = vsel %vm408_vm7, %v918_v29, %v932_v7 }
 0x5ef   :  { %v935_v61 = vadd.f32 %v933_v8, %v798_v34 }
 0x5f1   :  { %v937_v25 = vmul.f32 %v1036_v13, %v935_v61 }
 0x5f3   :  { %938 = vst.msk [vmem:[#allocation10] sm:$0xff] %vm143_vm0, %v937_v25 }
 0x5f4   :  { %1128 = shalt.err (!%p1125_p10)
}
 0x5f5   :  { %948 = dma.vmem_to_hbm [thread:$0]  %s946_s15, 128, %s1552_s5, [#allocation4]  }
 0x5f6   :  { %1143 = dma.done.wait [#allocation4], 128  }
 0x5f7   :  { %1144 = vsyncadd [#allocation4], 4294967168 }
 0x5f8   :  { %952 = vsyncpa [#allocation3], 1 }
 0x5f9   :  { %953 = vsyncpa [#allocation6], 1 }
 0x5fa   :  { %954 = vsyncpa [#allocation9], 1 }
 0x5fb   :  { %955 = vsyncpa [#allocation4], 1 }

</bundles_post_ra>
